<compile_context>
chip_gen: v7x
topology: tpu7x:2x2x1
jax: 0.10.0
libtpu: 0.0.40
codegen_flags: <defaults>
</compile_context>

<pallas_src>
import functools

import jax
import jax.numpy as jnp
from jax import lax
from jax.experimental import pallas as pl
from jax.experimental.pallas import tpu as pltpu


def _round_up(a: int, b: int) -> int:
    return ((a + b - 1) // b) * b


def _fit_tile(dim: int, target: int, align: int) -> int:
    """Largest tile <= target that is a multiple of `align` and divides `dim`.

    Falls back to the full dim (legal: block == array extent) if nothing fits.
    """
    t = min(target, dim)
    t -= t % align
    while t > 0 and dim % t != 0:
        t -= align
    return t if t > 0 else dim


# ---------------------------------------------------------------------------
# Pallas kernel: tiled (tm, tk) @ (tk, tn) GEMM with fused bias.
#  - weight arrives pre-transposed (K, N) and pre-cast (bf16) -> no in-kernel
#    transpose, bf16 MXU path.
#  - x tile is cast to the weight dtype on the VPU.
#  - f32 accumulator in VMEM scratch; bias folded in at k == 0.
# ---------------------------------------------------------------------------
def _linear_bias_kernel(x_ref, w_ref, b_ref, o_ref, acc_ref):
    k = pl.program_id(2)

    @pl.when(k == 0)
    def _():
        # acc <- broadcast(bias): removes a separate epilogue add.
        acc_ref[...] = jnp.broadcast_to(b_ref[...], acc_ref.shape)

    acc_ref[...] += jnp.dot(
        x_ref[...].astype(w_ref.dtype),   # VPU cast; HBM x stream stays f32
        w_ref[...],
        preferred_element_type=jnp.float32,
    )

    @pl.when(k == pl.num_programs(2) - 1)
    def _():
        o_ref[...] = acc_ref[...].astype(o_ref.dtype)


@functools.partial(jax.jit, static_argnames=("tm", "tn", "tk"))
def linear_kn_pallas(x2d, w_kn, bias2, *, tm=512, tn=512, tk=512):
    """out = x2d @ w_kn + bias2, via a Pallas TPU kernel.

    x2d   : (M, K)  float32 (K already padded to match w_kn)
    w_kn  : (K, N)  compute dtype (bf16), prepared/padded once at setup
    bias2 : (1, N)  float32, prepared/padded once at setup
    """
    M, K = x2d.shape
    K2, N = w_kn.shape
    assert K == K2 and bias2.shape == (1, N)

    # Only sublane alignment of M needs host-side padding (<= 7 rows, and only
    # when M % 8 != 0).  Trailing partial M blocks are handled by Pallas'
    # masked edge writes, so large activations are never copied.
    Mp = _round_up(M, 8)
    if Mp != M:
        x2d = jnp.pad(x2d, ((0, Mp - M), (0, 0)))

    tm_e = min(tm, Mp)                    # Mp and tm are multiples of 8
    tn_e = _fit_tile(N, tn, 128)          # N, K are tile multiples (prepared)
    tk_e = _fit_tile(K, tk, 128)
    grid = (pl.cdiv(Mp, tm_e), N // tn_e, K // tk_e)

    cost = pl.CostEstimate(
        flops=2 * Mp * N * K,
        transcendentals=0,
        bytes_accessed=(Mp * K * x2d.dtype.itemsize
                        + K * N * w_kn.dtype.itemsize
                        + Mp * N * 4 + N * 4),
    )

    out = pl.pallas_call(
        _linear_bias_kernel,
        out_shape=jax.ShapeDtypeStruct((Mp, N), x2d.dtype),
        grid_spec=pltpu.PrefetchScalarGridSpec(
            num_scalar_prefetch=0,
            grid=grid,
            in_specs=[
                pl.BlockSpec((tm_e, tk_e), lambda i, j, k: (i, k)),  # x (M,K)
                pl.BlockSpec((tk_e, tn_e), lambda i, j, k: (k, j)),  # w (K,N)
                pl.BlockSpec((1, tn_e), lambda i, j, k: (0, j)),     # bias
            ],
            out_specs=pl.BlockSpec((tm_e, tn_e), lambda i, j, k: (i, j)),
            scratch_shapes=[pltpu.VMEM((tm_e, tn_e), jnp.float32)],
        ),
        compiler_params=pltpu.CompilerParams(
            dimension_semantics=("parallel", "parallel", "arbitrary")
        ),
        cost_estimate=cost,
    )(x2d, w_kn, bias2)

    return out[:M]


# ---------------------------------------------------------------------------
# One-time parameter preparation (hoisted out of the per-call path).
# ---------------------------------------------------------------------------
def prepare_linear_params(weight, bias, *, compute_dtype=jnp.bfloat16,
                          tn=512, tk=512):
    """Transpose nn.Linear weight (N, K) -> (K, N), cast to the MXU compute
    dtype (bf16 by default), and zero-pad K / N up to tile multiples.  Bias is
    padded and kept in f32 (it is folded into the f32 accumulator)."""
    N, K = weight.shape
    tn_e = min(tn, _round_up(N, 128))
    tk_e = min(tk, _round_up(K, 128))
    Np = _round_up(N, tn_e)
    Kp = _round_up(K, tk_e)
    w_kn = jnp.asarray(weight).T.astype(compute_dtype)        # (K, N)
    w_kn = jnp.pad(w_kn, ((0, Kp - K), (0, Np - N)))          # zeros: exact
    b2 = jnp.pad(jnp.asarray(bias, jnp.float32), (0, Np - N)).reshape(1, Np)
    return w_kn, b2


# ---------------------------------------------------------------------------
# Module forward (glue: reshapes / top-k / gathers stay in plain JAX)
# ---------------------------------------------------------------------------
@functools.partial(jax.jit, static_argnames=("out_features", "topk_ratio"))
def cached_sddmm_linear_forward(x, w_kn, bias2, *, out_features, topk_ratio):
    """Replicates CachedSddmmLinear.forward.

    x      : (bsz, seq, in_features) float32
    w_kn   : prepared weight from prepare_linear_params  -- (Kp, Np) bf16
    bias2  : prepared bias from prepare_linear_params    -- (1, Np)  f32
    """
    bsz, seq, K = x.shape
    Kp, Np = w_kn.shape

    if seq != 1:
        # Dense path: full linear.
        x2d = x.reshape(bsz * seq, K)
        if Kp != K:
            x2d = jnp.pad(x2d, ((0, 0), (0, Kp - K)))   # zero K-pad: exact
        out = linear_kn_pallas(x2d, w_kn, bias2)
        return out[:, :out_features].reshape(bsz, seq, out_features)

    # ---- seq == 1: top-k sparsified path (empty-cache first-call behavior:
    # fresh top-k slice is selected, cached, and used). ----
    x2d = x.reshape(bsz, K)
    x_mean = jnp.abs(x2d).mean(axis=0).astype(jnp.float32)    # (K,)
    topk = max(1, int(K * float(topk_ratio)))                 # guard topk >= 1
    # TODO(synk): lax.top_k tie-breaking may differ from torch.argsort on ties.
    _, topk_idx = lax.top_k(x_mean, topk)

    # Pad the reduced K dim to a lane multiple.  Padded index slots point at a
    # real (finite) weight row; the matching x columns are zero, so they
    # contribute exactly 0 to the accumulation.
    topk_pad = _round_up(topk, 128)
    if topk_pad != topk:
        idx_pad = jnp.concatenate(
            [topk_idx, jnp.zeros((topk_pad - topk,), topk_idx.dtype)])
    else:
        idx_pad = topk_idx

    # Contiguous ROW gather on the prepared (K, N) layout (lane-dense, no
    # strided minor-dim gather, no transpose of the gathered slice).
    w_slice = jnp.take(w_kn, idx_pad, axis=0)                 # (topk_pad, Np)
    x_slice = jnp.take(x2d, topk_idx, axis=1)                 # (bsz, topk)
    if topk_pad != topk:
        x_slice = jnp.pad(x_slice, ((0, 0), (0, topk_pad - topk)))

    # bsz is tiny -> larger tk / tn collapse the grid to a handful of steps.
    out = linear_kn_pallas(x_slice, w_slice, bias2, tk=1024, tn=1024)
    return out[:, :out_features].reshape(bsz, 1, out_features)


# ---------------------------------------------------------------------------
# Test
# ---------------------------------------------------------------------------
if __name__ == "__main__":
    key = jax.random.PRNGKey(0)
    k_w, k_b, k_x1, k_x2 = jax.random.split(key, 4)

    in_features = 256
    out_features = 128
    topk_ratio = 0.5
    bsz = 2

    weight = jax.random.normal(k_w, (out_features, in_features), jnp.float32) * 0.02
    bias = jax.random.normal(k_b, (out_features,), jnp.float32) * 0.1

    # One-time parameter prep (transpose + bf16 cast + pad) — not per-call.
    w_kn, bias2 = prepare_linear_params(weight, bias)

    # --- dense path (seq != 1) ---
    seq = 8
    x_dense = jax.random.normal(k_x1, (bsz, seq, in_features), jnp.float32)
    out_dense = cached_sddmm_linear_forward(
        x_dense, w_kn, bias2, out_features=out_features, topk_ratio=topk_ratio)
    out_dense = jax.block_until_ready(out_dense)
    ref_dense = (x_dense.reshape(bsz * seq, -1) @ weight.T + bias
                 ).reshape(bsz, seq, out_features)
    assert out_dense.shape == (bsz, seq, out_features)
    # bf16 operands (f32 accumulation): loosen the tolerance vs. the pure-f32
    # reference accordingly.
    assert jnp.allclose(out_dense, ref_dense, atol=2e-2, rtol=2e-2), (
        f"dense max err {jnp.max(jnp.abs(out_dense - ref_dense))}")

    # --- sparse top-k path (seq == 1, empty cache -> cache & use topk slice) ---
    x_sparse = jax.random.normal(k_x2, (bsz, 1, in_features), jnp.float32)
    out_sparse = cached_sddmm_linear_forward(
        x_sparse, w_kn, bias2, out_features=out_features, topk_ratio=topk_ratio)
    out_sparse = jax.block_until_ready(out_sparse)

    # Pure-JAX (f32) reference for the sparse path.
    x2d = x_sparse.reshape(bsz, in_features)
    x_mean = jnp.abs(x2d).mean(axis=0)
    topk = max(1, int(in_features * topk_ratio))
    _, idx = lax.top_k(x_mean, topk)
    ref_sparse = (x2d[:, idx] @ weight[:, idx].T + bias).reshape(bsz, 1, -1)
    assert out_sparse.shape == (bsz, 1, out_features)
    assert jnp.allclose(out_sparse, ref_sparse, atol=2e-2, rtol=2e-2), (
        f"sparse max err {jnp.max(jnp.abs(out_sparse - ref_sparse))}")

    print("KERNEL_OK")
</pallas_src>

<mosaic_0001>
module attributes {stable_mosaic.version = 11 : i64} {
  func.func @_linear_bias_kernel(%arg0: i32, %arg1: i32, %arg2: i32, %arg3: memref<16x256xf32, #tpu.memory_space<vmem>>, %arg4: memref<256x128xbf16, #tpu.memory_space<vmem>>, %arg5: memref<1x128xf32, #tpu.memory_space<vmem>>, %arg6: memref<16x128xf32, #tpu.memory_space<vmem>>, %arg7: memref<16x128xf32, #tpu.memory_space<vmem>>) attributes {dimension_semantics = [#tpu.dimension_semantics<parallel>, #tpu.dimension_semantics<parallel>, #tpu.dimension_semantics<arbitrary>], iteration_bounds = array<i64: 1, 1, 1>, scalar_prefetch = 0 : i64, scratch_operands = 1 : i64, tpu.core_type = #tpu.core_type<tc>, window_params = [{transform_indices = @transform_0, window_bounds = array<i64: 16, 256>}, {transform_indices = @transform_1, window_bounds = array<i64: 256, 128>}, {transform_indices = @transform_2, window_bounds = array<i64: 1, 128>}, {transform_indices = @transform_3, window_bounds = array<i64: 16, 128>}]} {
    %c0_i32 = arith.constant 0 : i32
    %0 = arith.cmpi eq, %arg2, %c0_i32 : i32
    %1 = arith.extui %0 : i1 to i32
    %c0_i32_0 = arith.constant 0 : i32
    %2 = arith.cmpi ne, %1, %c0_i32_0 : i32
    scf.if %2 {
      %c0_10 = arith.constant 0 : index
      %c0_11 = arith.constant 0 : index
      %13 = vector.load %arg5[%c0_10, %c0_11] : memref<1x128xf32, #tpu.memory_space<vmem>>, vector<1x128xf32>
      %14 = vector.shape_cast %13 : vector<1x128xf32> to vector<1x128xf32>
      %15 = vector.broadcast %14 : vector<1x128xf32> to vector<16x128xf32>
      %c0_12 = arith.constant 0 : index
      %c0_13 = arith.constant 0 : index
      %16 = vector.load %arg7[%c0_12, %c0_13] : memref<16x128xf32, #tpu.memory_space<vmem>>, vector<16x128xf32>
      tpu.vector_store %arg7[%c0_12, %c0_13], %15 {strides = array<i32>} : memref<16x128xf32, #tpu.memory_space<vmem>>, vector<16x128xf32>,
    } else {
    }
    %c0 = arith.constant 0 : index
    %c0_1 = arith.constant 0 : index
    %3 = vector.load %arg7[%c0, %c0_1] : memref<16x128xf32, #tpu.memory_space<vmem>>, vector<16x128xf32>
    %c0_2 = arith.constant 0 : index
    %c0_3 = arith.constant 0 : index
    %4 = vector.load %arg3[%c0_2, %c0_3] : memref<16x256xf32, #tpu.memory_space<vmem>>, vector<16x256xf32>
    %5 = arith.truncf %4 : vector<16x256xf32> to vector<16x256xbf16>
    %c0_4 = arith.constant 0 : index
    %c0_5 = arith.constant 0 : index
    %6 = vector.load %arg4[%c0_4, %c0_5] : memref<256x128xbf16, #tpu.memory_space<vmem>>, vector<256x128xbf16>
    %cst = arith.constant dense<0.000000e+00> : vector<16x128xf32>
    %7 = tpu.matmul %5, %6, %cst {dimension_numbers = #tpu.dot_dimension_numbers<[1], [0], [0], [1], [0, 0, 1, 1], [], []>} : vector<16x256xbf16>, vector<256x128xbf16>, vector<16x128xf32> -> vector<16x128xf32>
    %8 = arith.addf %3, %7 : vector<16x128xf32>
    %c0_6 = arith.constant 0 : index
    %c0_7 = arith.constant 0 : index
    %9 = vector.load %arg7[%c0_6, %c0_7] : memref<16x128xf32, #tpu.memory_space<vmem>>, vector<16x128xf32>
    tpu.vector_store %arg7[%c0_6, %c0_7], %8 {strides = array<i32>} : memref<16x128xf32, #tpu.memory_space<vmem>>, vector<16x128xf32>,
    %c0_i32_8 = arith.constant 0 : i32
    %10 = arith.cmpi eq, %arg2, %c0_i32_8 : i32
    %11 = arith.extui %10 : i1 to i32
    %c0_i32_9 = arith.constant 0 : i32
    %12 = arith.cmpi ne, %11, %c0_i32_9 : i32
    scf.if %12 {
      %c0_10 = arith.constant 0 : index
      %c0_11 = arith.constant 0 : index
      %13 = vector.load %arg7[%c0_10, %c0_11] : memref<16x128xf32, #tpu.memory_space<vmem>>, vector<16x128xf32>
      %c0_12 = arith.constant 0 : index
      %c0_13 = arith.constant 0 : index
      %14 = vector.load %arg6[%c0_12, %c0_13] : memref<16x128xf32, #tpu.memory_space<vmem>>, vector<16x128xf32>
      tpu.vector_store %arg6[%c0_12, %c0_13], %13 {strides = array<i32>} : memref<16x128xf32, #tpu.memory_space<vmem>>, vector<16x128xf32>,
    } else {
    }
    return
  }
  func.func @transform_0(%arg0: i32, %arg1: i32, %arg2: i32) -> (i32, i32) {
    %c0_i32 = arith.constant 0 : i32
    return %arg0, %arg2 : i32, i32
  }
  func.func @transform_1(%arg0: i32, %arg1: i32, %arg2: i32) -> (i32, i32) {
    %c0_i32 = arith.constant 0 : i32
    return %arg2, %arg1 : i32, i32
  }
  func.func @transform_2(%arg0: i32, %arg1: i32, %arg2: i32) -> (i32, i32) {
    %c0_i32 = arith.constant 0 : i32
    %c0_i32_0 = arith.constant 0 : i32
    return %c0_i32, %arg1 : i32, i32
  }
  func.func @transform_3(%arg0: i32, %arg1: i32, %arg2: i32) -> (i32, i32) {
    %c0_i32 = arith.constant 0 : i32
    return %arg0, %arg1 : i32, i32
  }
}

</mosaic_0001>

<bundles_post_ra>
// kernel: linear_kn_pallas.1
= control target key start
LH: loop header
LB: loop body
LE: loop exit
PB: predicated region body
PF: predicated region fallthrough
CT: control target
= control target key end

     0   :  { %8 = vsyncpa [#allocation4], 0  ;;  %s467_s0 = inlined_call_operand.hbm [shape: f32[16,256], index: 0, kind: input, shape index: {}]   ;;  %s468_s1 = inlined_call_operand.hbm [shape: bf16[256,128], index: 1, kind: input, shape index: {}]   ;;  %s469_s2 = inlined_call_operand.vmem [shape: f32[1,128], index: 2, kind: input, shape index: {}]   ;;  %s470_s3 = inlined_call_operand.hbm [shape: f32[16,128], index: 3, kind: output, shape index: {}]  }
   0x1   :  { %9 = vsyncpa [#allocation7], 0 }
   0x2   :  { %10 = vsyncpa [#allocation5], 0  ;;  %s399_s12 = smov [#allocation3]   ;;  %s327_s16 = scalar_lea.hbm %s467_s0, 512 }
   0x3   :  { %s16_s13 = sshll.u32 %s399_s12, 4  ;;  %p328_p0 = scmp.ne.s32.totalorder %s467_s0, %s327_s16  ;;  %s17_s13 = int_to_ptr.vmem [resolvable:$true] %s16_s13 }
   0x4   :  { %p331_p1 = scmp.lt.u32.totalorder %s327_s16, %s467_s0 }
   0x6   :  { %p333_p2 = pnand %p331_p1, %p328_p0 }
   0x8   :  { %336 = shalt.err (!%p333_p2)
}
   0x9   :  { %s337_s21 = scalar_lea.vmem %s17_s13, 512  ;;  %p342_p4 = scmp.lt.s32.totalorder %s17_s13, %s17_s13 }
   0xa   :  { %p338_p3 = scmp.ne.s32.totalorder %s17_s13, %s337_s21  ;;  %p343_p5 = scmp.lt.s32.totalorder %s337_s21, %s337_s21 }
   0xc   :  { %p344_p6 = por %p343_p5, %p342_p4 }
   0xe   :  { %p345_p7 = pnand %p344_p6, %p338_p3 }
  0x10   :  { %348 = shalt.err (!%p345_p7)
}
  0x11   :  { %s400_s22 = smov 256   ;;  %s401_s23 = smov 16  }
  0x12   :  { %22 = dma.hbm_to_vmem [thread:$0]  %s467_s0, 512, %s17_s13, [#allocation4], %s400_s22, %s400_s22, %s401_s23  }
  0x13   :  { %s402_s26 = smov [#allocation6]   ;;  %s349_s30 = scalar_lea.hbm %s468_s1, 2048 }
  0x14   :  { %s28_s27 = sshll.u32 %s402_s26, 4  ;;  %p350_p8 = scmp.ne.s32.totalorder %s468_s1, %s349_s30  ;;  %s29_s27 = int_to_ptr.vmem [resolvable:$true] %s28_s27 }
  0x15   :  { %p353_p9 = scmp.lt.u32.totalorder %s349_s30, %s468_s1 }
  0x17   :  { %p355_p10 = pnand %p353_p9, %p350_p8 }
  0x19   :  { %358 = shalt.err (!%p355_p10)
}
  0x1a   :  { %s359_s8 = scalar_lea.vmem %s29_s27, 2048  ;;  %p364_p12 = scmp.lt.s32.totalorder %s29_s27, %s29_s27 }
  0x1b   :  { %p360_p11 = scmp.ne.s32.totalorder %s29_s27, %s359_s8  ;;  %p365_p13 = scmp.lt.s32.totalorder %s359_s8, %s359_s8 }
  0x1d   :  { %p366_p0 = por %p365_p13, %p364_p12 }
  0x1f   :  { %p367_p1 = pnand %p366_p0, %p360_p11 }
  0x21   :  { %370 = shalt.err (!%p367_p1)
}
  0x22   :  { %s403_s0 = smov 64   ;;  %s404_s9 = smov 4  }
  0x23   :  { %34 = dma.hbm_to_vmem [thread:$0]  %s468_s1, 2048, %s29_s27, [#allocation7], %s403_s0, %s403_s0, %s404_s9  }
  0x24   :  { %393 = dma.done.wait [#allocation4], 512  }
  0x25   :  { %394 = vsyncadd [#allocation4], 4294966784 }
  0x26   :  { %395 = dma.done.wait [#allocation7], 2048  }
  0x27   :  { %396 = vsyncadd [#allocation7], 4294965248  ;;  %v311_v0 = vld [vmem:[#allocation6 + $0x40] sm:$0xff]   ;;  %v313_v2 = vld [vmem:[#allocation6 + $0x48] sm:$0xff]   ;;  %s405_s13 = smov [#allocation8]  }
  0x28   :  { %v312_v1 = vld [vmem:[#allocation6] sm:$0xff]   ;;  %280 = vmatprep.subr.bf16.mxu0 %v311_v0  ;;  %v314_v3 = vld [vmem:[#allocation6 + $0x8] sm:$0xff]   ;;  %v315_v4 = vld [vmem:[#allocation6 + $0x50] sm:$0xff]   ;;  %s250_s14 = sshll.u32 %s405_s13, 4  ;;  %s251_s14 = int_to_ptr.vmem [resolvable:$true] %s250_s14 }
  0x29   :  { %281 = vmatpush3.bf16.msra.mxu0 %v312_v1  ;;  %v316_v5 = vld [vmem:[#allocation6 + $0x10] sm:$0xff]   ;;  %v317_v6 = vld [vmem:[#allocation6 + $0x58] sm:$0xff]   ;;  %v319_v8 = vld [vmem:[#allocation6 + $0x60] sm:$0xff]   ;;  %s371_s15 = scalar_lea.vmem %s251_s14, 256  ;;  %p376_p3 = scmp.lt.s32.totalorder %s251_s14, %s251_s14 }
  0x2a   :  { %282 = vmatprep.subr.bf16.mxu0 %v313_v2  ;;  %v318_v7 = vld [vmem:[#allocation6 + $0x18] sm:$0xff]   ;;  %v320_v9 = vld [vmem:[#allocation6 + $0x20] sm:$0xff]   ;;  %v321_v10 = vld [vmem:[#allocation6 + $0x68] sm:$0xff]   ;;  %p372_p2 = scmp.ne.s32.totalorder %s251_s14, %s371_s15  ;;  %p377_p4 = scmp.lt.s32.totalorder %s371_s15, %s371_s15 }
  0x2b   :  { %v60_v11 = vld [vmem:[#allocation3 + $0x8] sm:$0xff]  ;;  %v62_v12 = vld [vmem:[#allocation3 + $0x18] sm:$0xff]  ;;  %v323_v15 = vld [vmem:[#allocation6 + $0x70] sm:$0xff]  }
  0x2c   :  { %v64_v13 = vpack.c.bf16 %v62_v12, %v60_v11  ;;  %v322_v14 = vld [vmem:[#allocation6 + $0x28] sm:$0xff]   ;;  %v324_v16 = vld [vmem:[#allocation6 + $0x30] sm:$0xff]   ;;  %v325_v17 = vld [vmem:[#allocation6 + $0x78] sm:$0xff]   ;;  %p378_p5 = por %p377_p4, %p376_p3 }
  0x2d   :  { %283 = vmatpush3.bf16.msra.mxu0 %v314_v3  ;;  %v326_v18 = vld [vmem:[#allocation6 + $0x38] sm:$0xff]   ;;  %v59_v19 = vld [vmem:[#allocation3] sm:$0xff]  ;;  %v61_v20 = vld [vmem:[#allocation3 + $0x10] sm:$0xff] }
  0x2e   :  { %284 = vmatprep.subr.bf16.mxu0 %v315_v4  ;;  %225 = vmatprep.mubr.bf16.mxu0 %v64_v13  ;;  %v63_v21 = vpack.c.bf16 %v61_v20, %v59_v19  ;;  %v263_v23 = vld [vmem:[%s469_s2] ss:$0 sm:$0xff]  ;;  %p379_p6 = pnand %p378_p5, %p372_p2 }
  0x31   :  { %285 = vmatpush3.bf16.msra.mxu0 %v316_v5 }
  0x32   :  { %286 = vmatprep.subr.bf16.mxu0 %v317_v6 }
  0x35   :  { %287 = vmatpush3.bf16.msra.mxu0 %v318_v7 }
  0x36   :  { %288 = vmatprep.subr.bf16.mxu0 %v319_v8 }
  0x39   :  { %289 = vmatpush3.bf16.msra.mxu0 %v320_v9 }
  0x3a   :  { %290 = vmatprep.subr.bf16.mxu0 %v321_v10 }
  0x3d   :  { %291 = vmatpush3.bf16.msra.mxu0 %v322_v14 }
  0x3e   :  { %292 = vmatprep.subr.bf16.mxu0 %v323_v15 }
  0x41   :  { %293 = vmatpush3.bf16.msra.mxu0 %v324_v16 }
  0x42   :  { %294 = vmatprep.subr.bf16.mxu0 %v325_v17 }
  0x45   :  { %295 = vmatpush3.bf16.msra.mxu0 %v326_v18 }
  0x48   :  { %226 = vmatmul.mubr.bf16.vlgmr.msra.gmra.mrb[0].mxu0 %v63_v21 }
 0x11b   :  { %v296_v22 = vpop.f32.mrb[0].mxu0 }
 0x11c   :  { %v297_v24 = vpop.f32.mrb[1].mxu0 }
 0x11d   :  { %v298_v25 = vadd.f32 %v297_v24, %v296_v22  ;;  %v299_v26 = vpop.f32.mrb[2].mxu0 }
 0x11e   :  { %v300_v27 = vpop.f32.mrb[3].mxu0 }
 0x11f   :  { %v234_v28 = vadd.f32 %v298_v25, %v263_v23  ;;  %v301_v29 = vadd.f32 %v300_v27, %v299_v26 }
 0x121   :  { %243 = vst [vmem:[#allocation8] sm:$0xff] %v234_v28  ;;  %v235_v30 = vadd.f32 %v301_v29, %v263_v23 }
 0x123   :  { %244 = vst [vmem:[#allocation8 + $0x8] sm:$0xff] %v235_v30 }
 0x124   :  { %382 = shalt.err (!%p379_p6)
}
 0x125   :  { %s383_s17 = scalar_lea.hbm %s470_s3, 256 }
 0x126   :  { %p384_p7 = scmp.ne.s32.totalorder %s470_s3, %s383_s17  ;;  %p387_p8 = scmp.lt.u32.totalorder %s383_s17, %s470_s3 }
 0x128   :  { %p389_p9 = pnand %p387_p8, %p384_p7 }
 0x12a   :  { %392 = shalt.err (!%p389_p9)
}
 0x12b   :  { %s406_s22 = smov 128   ;;  %s407_s23 = smov 8  }
 0x12c   :  { %256 = dma.vmem_to_hbm [thread:$0]  %s251_s14, 256, %s470_s3, [#allocation5], %s406_s22, %s406_s22, %s407_s23  }
 0x12d   :  { %397 = dma.done.wait [#allocation5], 256  }
 0x12e   :  { %398 = vsyncadd [#allocation5], 4294967040 }
 0x12f   :  { %260 = vsyncpa [#allocation4], 1 }
 0x130   :  { %261 = vsyncpa [#allocation7], 1 }
 0x131   :  { %262 = vsyncpa [#allocation5], 1 }

</bundles_post_ra>
